<compile_context>
chip_gen: v5e
topology: v5e:2x2
jax: 0.10.0
libtpu: 0.0.40
codegen_flags: <defaults>
</compile_context>

<pallas_src>
import math
from functools import partial

import jax
import jax.numpy as jnp
from jax.experimental import pallas as pl
from jax.experimental.pallas import tpu as pltpu


def mha_kernel(q_ref, k_ref, v_ref, w_qkv_ref, b_qkv_ref, wo_ref, bo_ref,
               x_ref, attn_ref, *, n_heads, head_dim, inv_scale):
    # Blocks:
    #   q_ref    : (1, block_q, H) bf16
    #   k_ref/v_ref: (1, S, H)     bf16
    #   w_qkv_ref: (3, H, H)       bf16   (stacked wq|wk|wv)
    #   b_qkv_ref: (3, 1, H)       f32
    #   wo_ref   : (H, H)          bf16
    #   bo_ref   : (1, H)          f32
    q2 = q_ref[0]                      # (block_q, H)
    k2 = k_ref[0]                      # (S, H)
    v2 = v_ref[0]                      # (S, H)

    # Lane-dense projections: full-H-wide matmuls, f32 accumulation.
    Q = jnp.dot(q2, w_qkv_ref[0], preferred_element_type=jnp.float32) + b_qkv_ref[0]
    K = jnp.dot(k2, w_qkv_ref[1], preferred_element_type=jnp.float32) + b_qkv_ref[1]
    V = jnp.dot(v2, w_qkv_ref[2], preferred_element_type=jnp.float32) + b_qkv_ref[2]

    # Fold 1/sqrt(head_dim) into Q once (O(block_q*H)) instead of scaling every
    # (block_q, S) score tile.
    Qb = (Q * inv_scale).astype(jnp.bfloat16)
    Kb = K.astype(jnp.bfloat16)
    Vb = V.astype(jnp.bfloat16)

    ctx_heads = []
    for h in range(n_heads):           # static unroll; heads = lane slices
        s = h * head_dim
        Qh = Qb[:, s:s + head_dim]      # (block_q, hd)
        Kh = Kb[:, s:s + head_dim]      # (S, hd)
        Vh = Vb[:, s:s + head_dim]      # (S, hd)

        # Scores: contract head_dim; RHS consumed transposed by dot_general
        # (no explicit K.T / XLU transpose).
        energy = jax.lax.dot_general(
            Qh, Kh, (((1,), (1,)), ((), ())),
            preferred_element_type=jnp.float32)              # (block_q, S)

        # Numerically stable softmax in f32; divide -> approximate EUP recip.
        m = jnp.max(energy, axis=-1, keepdims=True)
        e = jnp.exp(energy - m)
        attn = e * pl.reciprocal(jnp.sum(e, axis=-1, keepdims=True), approx=True)

        # Whole (block_q, S) tile store of this head's probabilities.
        attn_ref[0, h] = attn.astype(attn_ref.dtype)

        # Dropout is identity in eval mode.
        ctx_heads.append(jnp.dot(attn.astype(jnp.bfloat16), Vh,
                                 preferred_element_type=jnp.float32))

    # Re-assemble (block_q, H) context along lanes; single lane-dense output
    # projection folds the cross-head reduction into the MXU f32 accumulator.
    ctx = jnp.concatenate(ctx_heads, axis=1).astype(jnp.bfloat16)   # (block_q, H)
    out = jnp.dot(ctx, wo_ref[...], preferred_element_type=jnp.float32) + bo_ref[...]
    x_ref[0] = out.astype(x_ref.dtype)


def mha_forward(q, k, v, params, n_heads, *, block_q=None,
                attn_dtype=jnp.float32):
    """Pallas multi-head attention. Grid = (batch, query_block)."""
    B, S, H = q.shape
    head_dim = H // n_heads
    wq, bq, wk, bk, wv, bv, wo, bo = params

    if block_q is None:
        block_q = min(S, 128)          # re-derive smaller on v7x (64 MiB VMEM)
    assert S % block_q == 0
    num_q = S // block_q

    # Stack projection weights/biases into single inputs (fewer DMA windows,
    # less double-buffered VMEM). Weights bf16 for the MXU; biases stay f32.
    w_qkv = jnp.stack([wq, wk, wv], axis=0).astype(jnp.bfloat16)         # (3,H,H)
    b_qkv = jnp.stack([bq, bk, bv], axis=0).reshape(3, 1, H).astype(jnp.float32)
    wo_b = wo.astype(jnp.bfloat16)                                       # (H,H)
    bo2 = bo.reshape(1, H).astype(jnp.float32)

    qb = q.astype(jnp.bfloat16)
    kb = k.astype(jnp.bfloat16)
    vb = v.astype(jnp.bfloat16)

    kernel = partial(mha_kernel, n_heads=n_heads, head_dim=head_dim,
                     inv_scale=1.0 / math.sqrt(head_dim))

    in_specs = [
        pl.BlockSpec((1, block_q, H), lambda b, qi: (b, qi, 0)),   # q (tiled)
        pl.BlockSpec((1, S, H),       lambda b, qi: (b, 0, 0)),    # k (full)
        pl.BlockSpec((1, S, H),       lambda b, qi: (b, 0, 0)),    # v (full)
        pl.BlockSpec((3, H, H),       lambda b, qi: (0, 0, 0)),    # wq|wk|wv
        pl.BlockSpec((3, 1, H),       lambda b, qi: (0, 0, 0)),    # bq|bk|bv
        pl.BlockSpec((H, H),          lambda b, qi: (0, 0)),       # wo
        pl.BlockSpec((1, H),          lambda b, qi: (0, 0)),       # bo
    ]
    out_shapes = (
        jax.ShapeDtypeStruct((B, S, H), jnp.float32),
        # NOTE: attn_dtype=jnp.bfloat16 halves the dominant S^2 HBM write at
        # production shapes; kept f32 here for exact softmax export.
        jax.ShapeDtypeStruct((B, n_heads, S, S), attn_dtype),
    )
    out_specs = (
        pl.BlockSpec((1, block_q, H),           lambda b, qi: (b, qi, 0)),
        pl.BlockSpec((1, n_heads, block_q, S),  lambda b, qi: (b, 0, qi, 0)),
    )

    return pl.pallas_call(
        kernel,
        out_shape=out_shapes,
        grid=(B, num_q),
        in_specs=in_specs,
        out_specs=out_specs,
        compiler_params=pltpu.CompilerParams(
            dimension_semantics=("parallel", "parallel")),
    )(qb, kb, vb, w_qkv, b_qkv, wo_b, bo2)


def mha_reference(q, k, v, params, n_heads):
    """Pure-JAX f32 reference mirroring the PyTorch forward (eval, no mask)."""
    wq, bq, wk, bk, wv, bv, wo, bo = params
    B, S, H = q.shape
    hd = H // n_heads
    Q = q @ wq + bq
    K = k @ wk + bk
    V = v @ wv + bv
    Qh = Q.reshape(B, S, n_heads, hd).transpose(0, 2, 1, 3)
    Kh = K.reshape(B, S, n_heads, hd).transpose(0, 2, 1, 3)
    Vh = V.reshape(B, S, n_heads, hd).transpose(0, 2, 1, 3)
    energy = jnp.einsum('bhqd,bhkd->bhqk', Qh, Kh) / math.sqrt(hd)
    attn = jax.nn.softmax(energy, axis=-1)
    xh = jnp.einsum('bhqk,bhkd->bhqd', attn, Vh)
    x = xh.transpose(0, 2, 1, 3).reshape(B, S, H)
    return x @ wo + bo, attn


if __name__ == "__main__":
    # Small shapes consistent with the module's forward.
    B, S, H, NH = 2, 8, 32, 4

    key = jax.random.PRNGKey(0)
    keys = jax.random.split(key, 11)

    q = jax.random.normal(keys[0], (B, S, H), dtype=jnp.float32)
    k = jax.random.normal(keys[1], (B, S, H), dtype=jnp.float32)
    v = jax.random.normal(keys[2], (B, S, H), dtype=jnp.float32)

    def init_linear(kw, kb):
        w = 0.05 * jax.random.normal(kw, (H, H), dtype=jnp.float32)   # (in, out)
        b = 0.05 * jax.random.normal(kb, (H,), dtype=jnp.float32)
        return w, b

    wq, bq = init_linear(keys[3], keys[4])
    wk, bk = init_linear(keys[5], keys[6])
    wv, bv = init_linear(keys[7], keys[8])
    wo, bo = init_linear(keys[9], keys[10])
    params = (wq, bq, wk, bk, wv, bv, wo, bo)

    x_out, attn_out = mha_forward(q, k, v, params, NH)
    jax.block_until_ready((x_out, attn_out))

    # Correctness check against pure-JAX f32 reference (tolerances loosened
    # for intentional bf16 MXU operands with f32 accumulation + approx recip).
    x_ref, attn_ref = mha_reference(q, k, v, params, NH)
    assert jnp.allclose(x_out, x_ref, atol=2e-2, rtol=2e-2)
    assert jnp.allclose(attn_out, attn_ref, atol=1e-2, rtol=1e-2)

    print("KERNEL_OK")
</pallas_src>

<mosaic_0001>
module attributes {stable_mosaic.version = 11 : i64} {
  func.func @mha_kernel(%arg0: i32, %arg1: i32, %arg2: memref<1x8x32xbf16, #tpu.memory_space<vmem>>, %arg3: memref<1x8x32xbf16, #tpu.memory_space<vmem>>, %arg4: memref<1x8x32xbf16, #tpu.memory_space<vmem>>, %arg5: memref<3x32x32xbf16, #tpu.memory_space<vmem>>, %arg6: memref<3x1x32xf32, #tpu.memory_space<vmem>>, %arg7: memref<32x32xbf16, #tpu.memory_space<vmem>>, %arg8: memref<1x32xf32, #tpu.memory_space<vmem>>, %arg9: memref<1x8x32xf32, #tpu.memory_space<vmem>>, %arg10: memref<1x4x8x8xf32, #tpu.memory_space<vmem>>) attributes {dimension_semantics = [#tpu.dimension_semantics<parallel>, #tpu.dimension_semantics<parallel>], iteration_bounds = array<i64: 2, 1>, scalar_prefetch = 0 : i64, scratch_operands = 0 : i64, tpu.core_type = #tpu.core_type<tc>, window_params = [{transform_indices = @transform_0, window_bounds = array<i64: 1, 8, 32>}, {transform_indices = @transform_1, window_bounds = array<i64: 1, 8, 32>}, {transform_indices = @transform_2, window_bounds = array<i64: 1, 8, 32>}, {pipeline_mode = #tpu.pipeline_mode<synchronous>, transform_indices = @transform_3, window_bounds = array<i64: 3, 32, 32>}, {pipeline_mode = #tpu.pipeline_mode<synchronous>, transform_indices = @transform_4, window_bounds = array<i64: 3, 1, 32>}, {pipeline_mode = #tpu.pipeline_mode<synchronous>, transform_indices = @transform_5, window_bounds = array<i64: 32, 32>}, {pipeline_mode = #tpu.pipeline_mode<synchronous>, transform_indices = @transform_6, window_bounds = array<i64: 1, 32>}, {transform_indices = @transform_7, window_bounds = array<i64: 1, 8, 32>}, {transform_indices = @transform_8, window_bounds = array<i64: 1, 4, 8, 8>}]} {
    %c0 = arith.constant 0 : index
    %c0_0 = arith.constant 0 : index
    %c0_1 = arith.constant 0 : index
    %0 = vector.load %arg2[%c0, %c0_0, %c0_1] : memref<1x8x32xbf16, #tpu.memory_space<vmem>>, vector<1x8x32xbf16>
    %1 = vector.shape_cast %0 : vector<1x8x32xbf16> to vector<8x32xbf16>
    %c0_2 = arith.constant 0 : index
    %c0_3 = arith.constant 0 : index
    %c0_4 = arith.constant 0 : index
    %2 = vector.load %arg3[%c0_2, %c0_3, %c0_4] : memref<1x8x32xbf16, #tpu.memory_space<vmem>>, vector<1x8x32xbf16>
    %3 = vector.shape_cast %2 : vector<1x8x32xbf16> to vector<8x32xbf16>
    %c0_5 = arith.constant 0 : index
    %c0_6 = arith.constant 0 : index
    %c0_7 = arith.constant 0 : index
    %4 = vector.load %arg4[%c0_5, %c0_6, %c0_7] : memref<1x8x32xbf16, #tpu.memory_space<vmem>>, vector<1x8x32xbf16>
    %5 = vector.shape_cast %4 : vector<1x8x32xbf16> to vector<8x32xbf16>
    %c0_8 = arith.constant 0 : index
    %c0_9 = arith.constant 0 : index
    %c0_10 = arith.constant 0 : index
    %6 = vector.load %arg5[%c0_8, %c0_9, %c0_10] : memref<3x32x32xbf16, #tpu.memory_space<vmem>>, vector<1x32x32xbf16>
    %7 = vector.shape_cast %6 : vector<1x32x32xbf16> to vector<32x32xbf16>
    %cst = arith.constant dense<0.000000e+00> : vector<8x32xf32>
    %8 = tpu.matmul %1, %7, %cst {dimension_numbers = #tpu.dot_dimension_numbers<[1], [0], [0], [1], [0, 0, 1, 1], [], []>} : vector<8x32xbf16>, vector<32x32xbf16>, vector<8x32xf32> -> vector<8x32xf32>
    %c0_11 = arith.constant 0 : index
    %c0_12 = arith.constant 0 : index
    %c0_13 = arith.constant 0 : index
    %9 = vector.load %arg6[%c0_11, %c0_12, %c0_13] : memref<3x1x32xf32, #tpu.memory_space<vmem>>, vector<1x1x32xf32>
    %10 = vector.shape_cast %9 : vector<1x1x32xf32> to vector<1x32xf32>
    %11 = vector.broadcast %10 : vector<1x32xf32> to vector<8x32xf32>
    %12 = arith.addf %8, %11 : vector<8x32xf32>
    %c1 = arith.constant 1 : index
    %c0_14 = arith.constant 0 : index
    %c0_15 = arith.constant 0 : index
    %13 = vector.load %arg5[%c1, %c0_14, %c0_15] : memref<3x32x32xbf16, #tpu.memory_space<vmem>>, vector<1x32x32xbf16>
    %14 = vector.shape_cast %13 : vector<1x32x32xbf16> to vector<32x32xbf16>
    %cst_16 = arith.constant dense<0.000000e+00> : vector<8x32xf32>
    %15 = tpu.matmul %3, %14, %cst_16 {dimension_numbers = #tpu.dot_dimension_numbers<[1], [0], [0], [1], [0, 0, 1, 1], [], []>} : vector<8x32xbf16>, vector<32x32xbf16>, vector<8x32xf32> -> vector<8x32xf32>
    %c1_17 = arith.constant 1 : index
    %c0_18 = arith.constant 0 : index
    %c0_19 = arith.constant 0 : index
    %16 = vector.load %arg6[%c1_17, %c0_18, %c0_19] : memref<3x1x32xf32, #tpu.memory_space<vmem>>, vector<1x1x32xf32>
    %17 = vector.shape_cast %16 : vector<1x1x32xf32> to vector<1x32xf32>
    %18 = vector.broadcast %17 : vector<1x32xf32> to vector<8x32xf32>
    %19 = arith.addf %15, %18 : vector<8x32xf32>
    %c2 = arith.constant 2 : index
    %c0_20 = arith.constant 0 : index
    %c0_21 = arith.constant 0 : index
    %20 = vector.load %arg5[%c2, %c0_20, %c0_21] : memref<3x32x32xbf16, #tpu.memory_space<vmem>>, vector<1x32x32xbf16>
    %21 = vector.shape_cast %20 : vector<1x32x32xbf16> to vector<32x32xbf16>
    %cst_22 = arith.constant dense<0.000000e+00> : vector<8x32xf32>
    %22 = tpu.matmul %5, %21, %cst_22 {dimension_numbers = #tpu.dot_dimension_numbers<[1], [0], [0], [1], [0, 0, 1, 1], [], []>} : vector<8x32xbf16>, vector<32x32xbf16>, vector<8x32xf32> -> vector<8x32xf32>
    %c2_23 = arith.constant 2 : index
    %c0_24 = arith.constant 0 : index
    %c0_25 = arith.constant 0 : index
    %23 = vector.load %arg6[%c2_23, %c0_24, %c0_25] : memref<3x1x32xf32, #tpu.memory_space<vmem>>, vector<1x1x32xf32>
    %24 = vector.shape_cast %23 : vector<1x1x32xf32> to vector<1x32xf32>
    %25 = vector.broadcast %24 : vector<1x32xf32> to vector<8x32xf32>
    %26 = arith.addf %22, %25 : vector<8x32xf32>
    %cst_26 = arith.constant 0.353553385 : f32
    %27 = vector.broadcast %cst_26 : f32 to vector<8x32xf32>
    %28 = arith.mulf %12, %27 : vector<8x32xf32>
    %29 = arith.truncf %28 : vector<8x32xf32> to vector<8x32xbf16>
    %30 = arith.truncf %19 : vector<8x32xf32> to vector<8x32xbf16>
    %31 = arith.truncf %26 : vector<8x32xf32> to vector<8x32xbf16>
    %32 = vector.extract_strided_slice %29 {offsets = [0, 0], sizes = [8, 8], strides = [1, 1]} : vector<8x32xbf16> to vector<8x8xbf16>
    %33 = vector.extract_strided_slice %30 {offsets = [0, 0], sizes = [8, 8], strides = [1, 1]} : vector<8x32xbf16> to vector<8x8xbf16>
    %34 = vector.extract_strided_slice %31 {offsets = [0, 0], sizes = [8, 8], strides = [1, 1]} : vector<8x32xbf16> to vector<8x8xbf16>
    %cst_27 = arith.constant dense<0.000000e+00> : vector<8x8xf32>
    %35 = tpu.matmul %32, %33, %cst_27 {dimension_numbers = #tpu.dot_dimension_numbers<[1], [1], [0], [0], [0, 0, 1, 0], [], []>} : vector<8x8xbf16>, vector<8x8xbf16>, vector<8x8xf32> -> vector<8x8xf32>
    %cst_28 = arith.constant dense<0xFF800000> : vector<8xf32>
    %36 = vector.multi_reduction <maximumf>, %35, %cst_28 [1] : vector<8x8xf32> to vector<8xf32>
    %37 = vector.shape_cast %36 : vector<8xf32> to vector<8x1xf32>
    %38 = vector.broadcast %37 : vector<8x1xf32> to vector<8x8xf32>
    %39 = arith.subf %35, %38 : vector<8x8xf32>
    %40 = math.exp %39 : vector<8x8xf32>
    %cst_29 = arith.constant dense<0.000000e+00> : vector<8xf32>
    %41 = vector.multi_reduction <add>, %40, %cst_29 [1] : vector<8x8xf32> to vector<8xf32>
    %42 = vector.shape_cast %41 : vector<8xf32> to vector<8x1xf32>
    %43 = tpu.reciprocal %42 {approx = true} : vector<8x1xf32> -> vector<8x1xf32>
    %44 = vector.broadcast %43 : vector<8x1xf32> to vector<8x8xf32>
    %45 = arith.mulf %40, %44 : vector<8x8xf32>
    %c0_30 = arith.constant 0 : index
    %c0_31 = arith.constant 0 : index
    %c0_32 = arith.constant 0 : index
    %c0_33 = arith.constant 0 : index
    %46 = vector.load %arg10[%c0_30, %c0_31, %c0_32, %c0_33] : memref<1x4x8x8xf32, #tpu.memory_space<vmem>>, vector<1x1x8x8xf32>
    %47 = vector.shape_cast %46 : vector<1x1x8x8xf32> to vector<8x8xf32>
    %48 = vector.shape_cast %45 : vector<8x8xf32> to vector<1x1x8x8xf32>
    tpu.vector_store %arg10[%c0_30, %c0_31, %c0_32, %c0_33], %48 {strides = array<i32>} : memref<1x4x8x8xf32, #tpu.memory_space<vmem>>, vector<1x1x8x8xf32>,
    %49 = arith.truncf %45 : vector<8x8xf32> to vector<8x8xbf16>
    %cst_34 = arith.constant dense<0.000000e+00> : vector<8x8xf32>
    %50 = tpu.matmul %49, %34, %cst_34 {dimension_numbers = #tpu.dot_dimension_numbers<[1], [0], [0], [1], [0, 0, 1, 1], [], []>} : vector<8x8xbf16>, vector<8x8xbf16>, vector<8x8xf32> -> vector<8x8xf32>
    %51 = vector.extract_strided_slice %29 {offsets = [0, 8], sizes = [8, 8], strides = [1, 1]} : vector<8x32xbf16> to vector<8x8xbf16>
    %52 = vector.extract_strided_slice %30 {offsets = [0, 8], sizes = [8, 8], strides = [1, 1]} : vector<8x32xbf16> to vector<8x8xbf16>
    %53 = vector.extract_strided_slice %31 {offsets = [0, 8], sizes = [8, 8], strides = [1, 1]} : vector<8x32xbf16> to vector<8x8xbf16>
    %cst_35 = arith.constant dense<0.000000e+00> : vector<8x8xf32>
    %54 = tpu.matmul %51, %52, %cst_35 {dimension_numbers = #tpu.dot_dimension_numbers<[1], [1], [0], [0], [0, 0, 1, 0], [], []>} : vector<8x8xbf16>, vector<8x8xbf16>, vector<8x8xf32> -> vector<8x8xf32>
    %cst_36 = arith.constant dense<0xFF800000> : vector<8xf32>
    %55 = vector.multi_reduction <maximumf>, %54, %cst_36 [1] : vector<8x8xf32> to vector<8xf32>
    %56 = vector.shape_cast %55 : vector<8xf32> to vector<8x1xf32>
    %57 = vector.broadcast %56 : vector<8x1xf32> to vector<8x8xf32>
    %58 = arith.subf %54, %57 : vector<8x8xf32>
    %59 = math.exp %58 : vector<8x8xf32>
    %cst_37 = arith.constant dense<0.000000e+00> : vector<8xf32>
    %60 = vector.multi_reduction <add>, %59, %cst_37 [1] : vector<8x8xf32> to vector<8xf32>
    %61 = vector.shape_cast %60 : vector<8xf32> to vector<8x1xf32>
    %62 = tpu.reciprocal %61 {approx = true} : vector<8x1xf32> -> vector<8x1xf32>
    %63 = vector.broadcast %62 : vector<8x1xf32> to vector<8x8xf32>
    %64 = arith.mulf %59, %63 : vector<8x8xf32>
    %c0_38 = arith.constant 0 : index
    %c1_39 = arith.constant 1 : index
    %c0_40 = arith.constant 0 : index
    %c0_41 = arith.constant 0 : index
    %65 = vector.load %arg10[%c0_38, %c1_39, %c0_40, %c0_41] : memref<1x4x8x8xf32, #tpu.memory_space<vmem>>, vector<1x1x8x8xf32>
    %66 = vector.shape_cast %65 : vector<1x1x8x8xf32> to vector<8x8xf32>
    %67 = vector.shape_cast %64 : vector<8x8xf32> to vector<1x1x8x8xf32>
    tpu.vector_store %arg10[%c0_38, %c1_39, %c0_40, %c0_41], %67 {strides = array<i32>} : memref<1x4x8x8xf32, #tpu.memory_space<vmem>>, vector<1x1x8x8xf32>,
    %68 = arith.truncf %64 : vector<8x8xf32> to vector<8x8xbf16>
    %cst_42 = arith.constant dense<0.000000e+00> : vector<8x8xf32>
    %69 = tpu.matmul %68, %53, %cst_42 {dimension_numbers = #tpu.dot_dimension_numbers<[1], [0], [0], [1], [0, 0, 1, 1], [], []>} : vector<8x8xbf16>, vector<8x8xbf16>, vector<8x8xf32> -> vector<8x8xf32>
    %70 = vector.extract_strided_slice %29 {offsets = [0, 16], sizes = [8, 8], strides = [1, 1]} : vector<8x32xbf16> to vector<8x8xbf16>
    %71 = vector.extract_strided_slice %30 {offsets = [0, 16], sizes = [8, 8], strides = [1, 1]} : vector<8x32xbf16> to vector<8x8xbf16>
    %72 = vector.extract_strided_slice %31 {offsets = [0, 16], sizes = [8, 8], strides = [1, 1]} : vector<8x32xbf16> to vector<8x8xbf16>
    %cst_43 = arith.constant dense<0.000000e+00> : vector<8x8xf32>
    %73 = tpu.matmul %70, %71, %cst_43 {dimension_numbers = #tpu.dot_dimension_numbers<[1], [1], [0], [0], [0, 0, 1, 0], [], []>} : vector<8x8xbf16>, vector<8x8xbf16>, vector<8x8xf32> -> vector<8x8xf32>
    %cst_44 = arith.constant dense<0xFF800000> : vector<8xf32>
    %74 = vector.multi_reduction <maximumf>, %73, %cst_44 [1] : vector<8x8xf32> to vector<8xf32>
    %75 = vector.shape_cast %74 : vector<8xf32> to vector<8x1xf32>
    %76 = vector.broadcast %75 : vector<8x1xf32> to vector<8x8xf32>
    %77 = arith.subf %73, %76 : vector<8x8xf32>
    %78 = math.exp %77 : vector<8x8xf32>
    %cst_45 = arith.constant dense<0.000000e+00> : vector<8xf32>
    %79 = vector.multi_reduction <add>, %78, %cst_45 [1] : vector<8x8xf32> to vector<8xf32>
    %80 = vector.shape_cast %79 : vector<8xf32> to vector<8x1xf32>
    %81 = tpu.reciprocal %80 {approx = true} : vector<8x1xf32> -> vector<8x1xf32>
    %82 = vector.broadcast %81 : vector<8x1xf32> to vector<8x8xf32>
    %83 = arith.mulf %78, %82 : vector<8x8xf32>
    %c0_46 = arith.constant 0 : index
    %c2_47 = arith.constant 2 : index
    %c0_48 = arith.constant 0 : index
    %c0_49 = arith.constant 0 : index
    %84 = vector.load %arg10[%c0_46, %c2_47, %c0_48, %c0_49] : memref<1x4x8x8xf32, #tpu.memory_space<vmem>>, vector<1x1x8x8xf32>
    %85 = vector.shape_cast %84 : vector<1x1x8x8xf32> to vector<8x8xf32>
    %86 = vector.shape_cast %83 : vector<8x8xf32> to vector<1x1x8x8xf32>
    tpu.vector_store %arg10[%c0_46, %c2_47, %c0_48, %c0_49], %86 {strides = array<i32>} : memref<1x4x8x8xf32, #tpu.memory_space<vmem>>, vector<1x1x8x8xf32>,
    %87 = arith.truncf %83 : vector<8x8xf32> to vector<8x8xbf16>
    %cst_50 = arith.constant dense<0.000000e+00> : vector<8x8xf32>
    %88 = tpu.matmul %87, %72, %cst_50 {dimension_numbers = #tpu.dot_dimension_numbers<[1], [0], [0], [1], [0, 0, 1, 1], [], []>} : vector<8x8xbf16>, vector<8x8xbf16>, vector<8x8xf32> -> vector<8x8xf32>
    %89 = vector.extract_strided_slice %29 {offsets = [0, 24], sizes = [8, 8], strides = [1, 1]} : vector<8x32xbf16> to vector<8x8xbf16>
    %90 = vector.extract_strided_slice %30 {offsets = [0, 24], sizes = [8, 8], strides = [1, 1]} : vector<8x32xbf16> to vector<8x8xbf16>
    %91 = vector.extract_strided_slice %31 {offsets = [0, 24], sizes = [8, 8], strides = [1, 1]} : vector<8x32xbf16> to vector<8x8xbf16>
    %cst_51 = arith.constant dense<0.000000e+00> : vector<8x8xf32>
    %92 = tpu.matmul %89, %90, %cst_51 {dimension_numbers = #tpu.dot_dimension_numbers<[1], [1], [0], [0], [0, 0, 1, 0], [], []>} : vector<8x8xbf16>, vector<8x8xbf16>, vector<8x8xf32> -> vector<8x8xf32>
    %cst_52 = arith.constant dense<0xFF800000> : vector<8xf32>
    %93 = vector.multi_reduction <maximumf>, %92, %cst_52 [1] : vector<8x8xf32> to vector<8xf32>
    %94 = vector.shape_cast %93 : vector<8xf32> to vector<8x1xf32>
    %95 = vector.broadcast %94 : vector<8x1xf32> to vector<8x8xf32>
    %96 = arith.subf %92, %95 : vector<8x8xf32>
    %97 = math.exp %96 : vector<8x8xf32>
    %cst_53 = arith.constant dense<0.000000e+00> : vector<8xf32>
    %98 = vector.multi_reduction <add>, %97, %cst_53 [1] : vector<8x8xf32> to vector<8xf32>
    %99 = vector.shape_cast %98 : vector<8xf32> to vector<8x1xf32>
    %100 = tpu.reciprocal %99 {approx = true} : vector<8x1xf32> -> vector<8x1xf32>
    %101 = vector.broadcast %100 : vector<8x1xf32> to vector<8x8xf32>
    %102 = arith.mulf %97, %101 : vector<8x8xf32>
    %c0_54 = arith.constant 0 : index
    %c3 = arith.constant 3 : index
    %c0_55 = arith.constant 0 : index
    %c0_56 = arith.constant 0 : index
    %103 = vector.load %arg10[%c0_54, %c3, %c0_55, %c0_56] : memref<1x4x8x8xf32, #tpu.memory_space<vmem>>, vector<1x1x8x8xf32>
    %104 = vector.shape_cast %103 : vector<1x1x8x8xf32> to vector<8x8xf32>
    %105 = vector.shape_cast %102 : vector<8x8xf32> to vector<1x1x8x8xf32>
    tpu.vector_store %arg10[%c0_54, %c3, %c0_55, %c0_56], %105 {strides = array<i32>} : memref<1x4x8x8xf32, #tpu.memory_space<vmem>>, vector<1x1x8x8xf32>,
    %106 = arith.truncf %102 : vector<8x8xf32> to vector<8x8xbf16>
    %cst_57 = arith.constant dense<0.000000e+00> : vector<8x8xf32>
    %107 = tpu.matmul %106, %91, %cst_57 {dimension_numbers = #tpu.dot_dimension_numbers<[1], [0], [0], [1], [0, 0, 1, 1], [], []>} : vector<8x8xbf16>, vector<8x8xbf16>, vector<8x8xf32> -> vector<8x8xf32>
    %108 = tpu.concatenate %50, %69, %88, %107 in 1 : vector<8x8xf32>, vector<8x8xf32>, vector<8x8xf32>, vector<8x8xf32> -> vector<8x32xf32>
    %109 = arith.truncf %108 : vector<8x32xf32> to vector<8x32xbf16>
    %c0_58 = arith.constant 0 : index
    %c0_59 = arith.constant 0 : index
    %110 = vector.load %arg7[%c0_58, %c0_59] : memref<32x32xbf16, #tpu.memory_space<vmem>>, vector<32x32xbf16>
    %cst_60 = arith.constant dense<0.000000e+00> : vector<8x32xf32>
    %111 = tpu.matmul %109, %110, %cst_60 {dimension_numbers = #tpu.dot_dimension_numbers<[1], [0], [0], [1], [0, 0, 1, 1], [], []>} : vector<8x32xbf16>, vector<32x32xbf16>, vector<8x32xf32> -> vector<8x32xf32>
    %c0_61 = arith.constant 0 : index
    %c0_62 = arith.constant 0 : index
    %112 = vector.load %arg8[%c0_61, %c0_62] : memref<1x32xf32, #tpu.memory_space<vmem>>, vector<1x32xf32>
    %113 = vector.broadcast %112 : vector<1x32xf32> to vector<8x32xf32>
    %114 = arith.addf %111, %113 : vector<8x32xf32>
    %c0_63 = arith.constant 0 : index
    %c0_64 = arith.constant 0 : index
    %c0_65 = arith.constant 0 : index
    %115 = vector.load %arg9[%c0_63, %c0_64, %c0_65] : memref<1x8x32xf32, #tpu.memory_space<vmem>>, vector<1x8x32xf32>
    %116 = vector.shape_cast %115 : vector<1x8x32xf32> to vector<8x32xf32>
    %117 = vector.shape_cast %114 : vector<8x32xf32> to vector<1x8x32xf32>
    tpu.vector_store %arg9[%c0_63, %c0_64, %c0_65], %117 {strides = array<i32>} : memref<1x8x32xf32, #tpu.memory_space<vmem>>, vector<1x8x32xf32>,
    return
  }
  func.func @transform_0(%arg0: i32, %arg1: i32) -> (i32, i32, i32) {
    %c0_i32 = arith.constant 0 : i32
    %c0_i32_0 = arith.constant 0 : i32
    return %arg0, %arg1, %c0_i32 : i32, i32, i32
  }
  func.func @transform_1(%arg0: i32, %arg1: i32) -> (i32, i32, i32) {
    %c0_i32 = arith.constant 0 : i32
    %c0_i32_0 = arith.constant 0 : i32
    %c0_i32_1 = arith.constant 0 : i32
    return %arg0, %c0_i32, %c0_i32_0 : i32, i32, i32
  }
  func.func @transform_2(%arg0: i32, %arg1: i32) -> (i32, i32, i32) {
    %c0_i32 = arith.constant 0 : i32
    %c0_i32_0 = arith.constant 0 : i32
    %c0_i32_1 = arith.constant 0 : i32
    return %arg0, %c0_i32, %c0_i32_0 : i32, i32, i32
  }
  func.func @transform_3(%arg0: i32, %arg1: i32) -> (i32, i32, i32) {
    %c0_i32 = arith.constant 0 : i32
    %c0_i32_0 = arith.constant 0 : i32
    %c0_i32_1 = arith.constant 0 : i32
    %c0_i32_2 = arith.constant 0 : i32
    return %c0_i32, %c0_i32_0, %c0_i32_1 : i32, i32, i32
  }
  func.func @transform_4(%arg0: i32, %arg1: i32) -> (i32, i32, i32) {
    %c0_i32 = arith.constant 0 : i32
    %c0_i32_0 = arith.constant 0 : i32
    %c0_i32_1 = arith.constant 0 : i32
    %c0_i32_2 = arith.constant 0 : i32
    return %c0_i32, %c0_i32_0, %c0_i32_1 : i32, i32, i32
  }
  func.func @transform_5(%arg0: i32, %arg1: i32) -> (i32, i32) {
    %c0_i32 = arith.constant 0 : i32
    %c0_i32_0 = arith.constant 0 : i32
    %c0_i32_1 = arith.constant 0 : i32
    return %c0_i32, %c0_i32_0 : i32, i32
  }
  func.func @transform_6(%arg0: i32, %arg1: i32) -> (i32, i32) {
    %c0_i32 = arith.constant 0 : i32
    %c0_i32_0 = arith.constant 0 : i32
    %c0_i32_1 = arith.constant 0 : i32
    return %c0_i32, %c0_i32_0 : i32, i32
  }
  func.func @transform_7(%arg0: i32, %arg1: i32) -> (i32, i32, i32) {
    %c0_i32 = arith.constant 0 : i32
    %c0_i32_0 = arith.constant 0 : i32
    return %arg0, %arg1, %c0_i32 : i32, i32, i32
  }
  func.func @transform_8(%arg0: i32, %arg1: i32) -> (i32, i32, i32, i32) {
    %c0_i32 = arith.constant 0 : i32
    %c0_i32_0 = arith.constant 0 : i32
    %c0_i32_1 = arith.constant 0 : i32
    return %arg0, %c0_i32, %arg1, %c0_i32_0 : i32, i32, i32, i32
  }
}

</mosaic_0001>

<bundles_post_ra>
// kernel: tpu_custom_call.1
= control target key start
LH: loop header
LB: loop body
LE: loop exit
PB: predicated region body
PF: predicated region fallthrough
CT: control target
= control target key end

     0   :  { %s1907_s0 = inlined_call_operand.hbm [shape: bf16[2,8,32], index: 0, kind: input, shape index: {}]   ;;  %s1908_s1 = inlined_call_operand.hbm [shape: bf16[2,8,32], index: 1, kind: input, shape index: {}]   ;;  %s1909_s2 = inlined_call_operand.hbm [shape: bf16[2,8,32], index: 2, kind: input, shape index: {}]   ;;  %s1910_s3 = inlined_call_operand.hbm [shape: bf16[3,32,32], index: 3, kind: input, shape index: {}]   ;;  %s1911_s4 = inlined_call_operand.vmem [shape: f32[3,1,32], index: 4, kind: input, shape index: {}]   ;;  %s1912_s5 = inlined_call_operand.hbm [shape: bf16[32,32], index: 5, kind: input, shape index: {}]   ;;  %s1913_s6 = inlined_call_operand.vmem [shape: f32[1,32], index: 6, kind: input, shape index: {}]   ;;  %s1914_s7 = inlined_call_operand.hbm [shape: f32[2,8,32], index: 7, kind: output, shape index: {0}]   ;;  %s1915_s8 = inlined_call_operand.hbm [shape: f32[2,4,8,8], index: 8, kind: output, shape index: {1}]  }
   0x1   :  { %1927 = sst [smem:[#allocation26_spill]] %s1908_s1 }
   0x2   :  { %1928 = sst [smem:[#allocation27_spill]] %s1910_s3 }
   0x3   :  { %1929 = sst [smem:[#allocation28_spill]] %s1912_s5 }
   0x4   :  { %1930 = sst [smem:[#allocation29_spill]] %s1913_s6 }
   0x5   :  { %1931 = sst [smem:[#allocation30_spill]] %s1914_s7 }
   0x6   :  { %1932 = sst [smem:[#allocation31_spill]] %s1915_s8 }
   0x7   :  { %14 = vsyncpa [#allocation3], 0 }
   0x8   :  { %16 = vsyncpa [#allocation3 + $0x1], 0 }
   0x9   :  { %17 = vsyncpa [#allocation6], 0 }
   0xa   :  { %19 = vsyncpa [#allocation6 + $0x1], 0 }
   0xb   :  { %20 = vsyncpa [#allocation9], 0 }
   0xc   :  { %21 = vsyncpa [#allocation4], 0 }
   0xd   :  { %23 = vsyncpa [#allocation4 + $0x1], 0 }
   0xe   :  { %24 = vsyncpa [#allocation13], 0 }
   0xf   :  { %26 = vsyncpa [#allocation13 + $0x1], 0  ;;  %s1632_s27 = smov 0   ;;  %s1634_s28 = smov 0  }
  0x10   :  { %s1636_s29 = smov 0   ;;  %s1638_s30 = smov 0  }
  0x11   :  { %s1640_s9 = smov 0   ;;  %s1642_s10 = smov 0  }
  0x12 LB: > { %1933 = sst [smem:[#allocation19_spill]] %s1554_s27  ;;  %s1663_s11 = sadd.s32 4294967295, %s1574_s10   ;;  %s1574_s10 = sphi %s1642_s10, %s32_s10   ;;  %s1570_s9 = sphi %s1640_s9, %s1962_s9   ;;  %s1566_s30 = sphi %s1638_s30, %s1961_s30   ;;  %s1562_s29 = sphi %s1636_s29, %s1960_s29   ;;  %s1558_s28 = sphi %s1634_s28, %s1964_s28   ;;  %s1554_s27 = sphi %s1632_s27, %s1963_s27  }
  0x13   : > { %1934 = sst [smem:[#allocation20_spill]] %s1562_s29  ;;  %p1092_p0 = scmp.ge.s32.totalorder %s1574_s10, 1 }
  0x14   : > { %1935 = sst [smem:[#allocation21_spill]] %s1570_s9  ;;  %p67_p1 = scmp.eq.s32.totalorder %s1663_s11, 0 }
  0x15   : > { %1936 = sst [smem:[#allocation22_spill]] %s1574_s10  ;;  %p269_p2 = scmp.lt.s32.totalorder %s1574_s10, 3 }
  0x16   : > { %s1937_s3 = sld [smem:[#allocation27_spill]]  ;;  %s1576_s16 = smov [#allocation8]  }
  0x17   : > { %p1671_p3 = pnand %p1092_p0, %p269_p2  ;;  %s282_s17 = sshll.u32 %s1576_s16, 4  ;;  %s283_s17 = int_to_ptr.vmem [resolvable:$true] %s282_s17 }
  0x18   : > { %s1916_s19 = smov 64   ;;  %s1917_s20 = smov 4  }
  0x19   : > { %p1193_p4 = pneg %p1671_p3  ;;  %s1091_s21 = sadd.s32 4294967294, %s1574_s10  }
  0x1a   : > { %s44_s22 = sadd.s32 1, %s1570_s9  ;;  %s53_s23 = sadd.s32 1, %s1562_s29 }
  0x1b   : > { %p1679_p5 = pnand %p1193_p4, %p67_p1  ;;  %p46_p7 = scmp.ge.s32.totalorder %s44_s22, 2 }
  0x1c   : > { %s280_s14 = sshll.u32 %s1937_s3, 4  ;;  %p60_p8 = scmp.ne.s32.totalorder %s1562_s29, %s1558_s28  ;;  %s281_s14 = int_to_ptr.hbm [resolvable:$true] %s280_s14 }
  0x1d   : > { %1196 = dma.hbm_to_vmem [thread:$0]  (!%p1679_p5), %s281_s14, 768, %s283_s17, [#allocation9], %s1916_s19, %s1916_s19, %s1917_s20  }
  0x1e   : > { %p61_p9 = scmp.eq.s32.totalorder %s1574_s10, 0  ;;  %p66_p10 = scmp.ne.s32.totalorder %s1558_s28, %s1554_s27 }
  0x1f   : > { %s1966_s22 = smov (%p46_p7, %s44_s22), 0  ;;  %p228_p13 = scmp.eq.s32.totalorder %s1663_s11, 1 }
  0x20   : > { %1940 = sst [smem:[#allocation23_spill]] %s1966_s22  ;;  %p1699_p11 = por %p61_p9, %p60_p8 }
  0x21   : > { %p1705_p12 = por %p67_p1, %p66_p10  ;;  %s48_s26 = ssub.s32 %s1570_s9, %s1966_s22 }
  0x22   : > { %p51_p0 = scmp.eq.s32.totalorder %s48_s26, 0  ;;  %p234_p2 = scmp.eq.s32.totalorder %s1091_s21, 1 }
  0x23   : > { %p1712_p4 = por %p228_p13, %p60_p8  ;;  %p1219_p7 = scmp.lt.s32.totalorder %s1574_s10, 2 }
  0x24   : > { %s1718_s13 = scalar_select %p51_p0, %s1562_s29, %s53_s23  }
  0x25   : > { %p1720_p9 = por %p234_p2, %p66_p10  ;;  %s316_s16 = sand.u32 1, %s1562_s29  }
  0x26   : > { %1944 = sst [smem:[#allocation24_spill]] %s1718_s13  ;;  %s1725_s17 = sshll.u32 %s316_s16, 2 }
  0x27   : > { %s1945_s14 = scalar_select %p1720_p9, 1, 0 }
  0x28   : > { %s1097_s19 = sshll.u32 %s1570_s9, 2  ;;  %p1730_p6 = pnand %p1219_p7, %p1699_p11 }
  0x29   : > { %1946 = sst [smem:[#allocation25_spill]] %s1945_s14  ;;  %s336_s26 = sand.u32 1, %s1574_s10  }
  0x2a   : > { %s1948_s1 = sld [smem:[#allocation26_spill]]  ;;  %s340_s13 = scalar_lea.vmem [#allocation5], %s1725_s17 }
  0x2b   : > { %s348_s29 = sshll.u32 %s340_s13, 4  ;;  %s337_s9 = scalar_lea.sflag [#allocation6], %s336_s26  ;;  %s349_s29 = int_to_ptr.vmem [resolvable:$true] %s348_s29 }
  0x2c   : > { %s1949_s5 = sld [smem:[#allocation28_spill]]  ;;  %s1579_s10 = smov [#allocation10]  }
  0x2d   : > { %s299_s6 = sshll.u32 %s1579_s10, 4  ;;  %s1950_s20 = smov 4   ;;  %s300_s6 = int_to_ptr.vmem [resolvable:$true] %s299_s6 }
  0x2e   : > { %s325_s26 = scalar_lea.hbm %s1907_s0, %s1097_s19  ;;  %s317_s14 = scalar_lea.sflag [#allocation3], %s316_s16 }
  0x2f   : > { %s363_s18 = scalar_lea.hbm %s1909_s2, %s1097_s19  ;;  %s359_s7 = scalar_lea.vmem [#allocation7], %s1725_s17 }
  0x30   : > { %s344_s3 = scalar_lea.hbm %s1948_s1, %s1097_s19  ;;  %s367_s8 = sshll.u32 %s359_s7, 4  ;;  %s368_s8 = int_to_ptr.vmem [resolvable:$true] %s367_s8 }
  0x31   : > { %s346_s22 = sshll.u32 %s344_s3, 4  ;;  %s1951_s3 = smov 64   ;;  %s347_s22 = int_to_ptr.hbm [resolvable:$true] %s346_s22 }
  0x32   : > { %1206 = dma.hbm_to_vmem [thread:$0]  (!%p1730_p6), %s347_s22, 64, %s349_s29, %s337_s9  }
  0x33   : > { %s297_s27 = sshll.u32 %s1949_s5, 4  ;;  %s327_s29 = sshll.u32 %s325_s26, 4  ;;  %s298_s27 = int_to_ptr.hbm [resolvable:$true] %s297_s27  ;;  %s328_s29 = int_to_ptr.hbm [resolvable:$true] %s327_s29 }
  0x34   : > { %1199 = dma.hbm_to_vmem [thread:$0]  (!%p1679_p5), %s298_s27, 256, %s300_s6, [#allocation9], %s1951_s3, %s1951_s3, %s1950_s20  }
  0x35   : > { %s320_s22 = scalar_lea.vmem [#allocation2], %s1725_s17  ;;  %s365_s5 = sshll.u32 %s363_s18, 4  ;;  %s366_s5 = int_to_ptr.hbm [resolvable:$true] %s365_s5 }
  0x36   : > { %s329_s1 = sshll.u32 %s320_s22, 4  ;;  %376 = sbr.rel (%p1671_p3) target bundleno = 1139 (0x473), region = 48  ;;  %s330_s1 = int_to_ptr.vmem [resolvable:$true] %s329_s1 }
  0x37   : > { %1203 = dma.hbm_to_vmem [thread:$0]  (!%p1730_p6), %s328_s29, 64, %s330_s1, %s317_s14  }
  0x38   : > { %1209 = dma.hbm_to_vmem [thread:$0]  (!%p1730_p6), %s366_s5, 64, %s368_s8, %s337_s9  }
  0x39   : > { %s1764_s6 = sand.u32 (!%p1671_p3), 1, %s1558_s28  }
  0x3a   : > { %s1767_s1 = sshll.u32 (!%p1671_p3), %s1764_s6, 2  ;;  %s379_s27 = scalar_lea.sflag (!%p1671_p3), [#allocation3], %s1764_s6 }
  0x3b   : > { %s382_s19 = scalar_lea.vmem [#allocation2], %s1767_s1 }
  0x3c   : > { %1533 = dma.done.wait (%p1705_p12), %s379_s27, 64  }
  0x3d   : > { %1535 = vsyncadd (%p1705_p12), %s379_s27, 4294967232  ;;  %s388_s5 = sand.u32 1, %s1663_s11   ;;  %s392_s8 = scalar_lea.vmem [#allocation5], %s1767_s1 }
  0x3e   : > { %s389_s7 = scalar_lea.sflag [#allocation6], %s388_s5 }
  0x3f   : > { %1537 = dma.done.wait (%p1705_p12), %s389_s7, 128  }
  0x40   : > { %1539 = vsyncadd (%p1705_p12), %s389_s7, 4294967168  ;;  %s402_s9 = scalar_lea.vmem [#allocation7], %s1767_s1 }
  0x41   : > { %1541 = dma.done.wait (%p67_p1), [#allocation9], 1024  }
  0x42   : > { %1543 = vsyncadd (%p67_p1), [#allocation9], 4294966272  ;;  %v1167_v0 = vld [vmem:[#allocation8 + $0x8] sm:$0xff]  ;;  %v1169_v1 = vld [vmem:[#allocation8 + $0x18] sm:$0xff]  ;;  %vm485_vm0 = vcmask 261120   ;;  %vm582_vm1 = vcmask 64512  }
  0x43   : > { %v1166_v2 = vld [vmem:[#allocation8] sm:$0xff]  ;;  %495 = vmatpush.bf16.msra.mxu0 %v1167_v0  ;;  %533 = vmatpush.bf16.msra.mxu1 %v1169_v1  ;;  %v1168_v3 = vld [vmem:[#allocation8 + $0x10] sm:$0xff]  ;;  %v462_v4 = vld [vmem:[%s382_s19] sm:$0xf]  ;;  %s1580_s17 = smov 112   ;;  %s1581_s21 = smov 120  }
  0x44   : > { %v463_v5 = vld [vmem:[%s392_s8] sm:$0xf]  ;;  %v1282_v6 = vld [vmem:[%s1911_s4] ss:$0 sm:$0xff]  ;;  %v1283_v7 = vld [vmem:[%s1911_s4 + $0x1] ss:$0 sm:$0xff] }
  0x45   : > { %s1582_s20 = smov 104   ;;  %v1171_v22 = vld [vmem:[#allocation8 + $0x28] sm:$0xff]  ;;  %v1170_v35 = vld [vmem:[#allocation8 + $0x20] sm:$0xff]  ;;  %v464_v36 = vld [vmem:[%s402_s9] sm:$0xf]  ;;  %vm618_vm2 = vcmask 1043456  }
  0x46   : > { %571 = vmatpush.bf16.msra.mxu2 %v1171_v22  ;;  %v1284_v51 = vld [vmem:[%s1911_s4 + $0x2] ss:$0 sm:$0xff]  ;;  %s1109_s23 = sshll.u32 %s1764_s6, 5  ;;  %s1583_s29 = smov 8   ;;  %vm831_vm3 = vcmask 130048   ;;  %vm833_vm4 = vcmask 195584  }
  0x47   : > { %496 = vmatpush.bf16.msra.mxu0 %v1166_v2  ;;  %534 = vmatpush.bf16.msra.mxu1 %v1168_v3  ;;  %s1823_s26 = scalar_lea.vmem [#allocation12], %s1109_s23  ;;  %s1584_s22 = smov 24  }
  0x48   : > { %s1585_s14 = smov 16   ;;  %s1174_s10 = sshll.u32 %s1566_s30, 5 }
  0x49   : > { %s1952_s1 = sld [smem:[#allocation31_spill]]  ;;  %s907_s19 = sshll.u32 %s1823_s26, 4  ;;  %s908_s19 = int_to_ptr.vmem [resolvable:$true] %s907_s19 }
  0x4a   : > { %1118 = vmatmul.msk.bf16.vlgmr.msra.gmra.mxu0 %vm485_vm0, %v462_v4  ;;  %1128 = vmatmul.msk.bf16.vlgmr.msra.gmra.mxu1 %vm485_vm0, %v463_v5  ;;  %s879_s7 = scalar_lea.sflag [#allocation13], %s1764_s6 }
  0x4b   : > { %572 = vmatpush.bf16.msra.mxu2 %v1170_v35 }
  0x4e   : > { %1138 = vmatmul.msk.bf16.vlgmr.msra.gmra.mxu2 %vm485_vm0, %v464_v36 }
  0x4f   : > { %s906_s27 = scalar_lea.hbm %s1952_s1, %s1174_s10  ;;  %s1472_s11 = scalar_lea.hbm %s1952_s1, 64 }
  0x50   : > { %s909_s5 = sshll.u32 %s906_s27, 4  ;;  %s910_s5 = int_to_ptr.hbm [resolvable:$true] %s909_s5 }
  0x51   : > { %s1466_s8 = sshra.s32 %s910_s5, 4  ;;  %s1467_s8 = int_to_ptr.hbm [resolvable:$true] %s1466_s8 }
  0x52   : > { %s1468_s9 = scalar_lea.hbm %s1467_s8, 32  ;;  %p1473_p6 = scmp.lt.s32.totalorder %s1467_s8, %s1952_s1 }
  0x53   : > { %p1469_p1 = scmp.ne.s32.totalorder %s1467_s8, %s1468_s9  ;;  %p1474_p8 = scmp.lt.s32.totalorder %s1472_s11, %s1468_s9 }
  0x55   : > { %p1470_p3 = pnand %p1469_p1, %p1712_p4  ;;  %p1475_p10 = por %p1474_p8, %p1473_p6 }
  0x57   : > { %p1471_p5 = pneg %p1470_p3 }
  0x59   : > { %p1476_p11 = pnand %p1475_p10, %p1471_p5 }
  0xc7   : > { %v498_v8 = vpop.f32.mrf.mxu0  ;;  %v536_v9 = vpop.f32.mrf.mxu1 }
  0xc8   : > { %v499_v10 = vadd.f32 %v1282_v6, %v498_v8  ;;  %v537_v11 = vadd.f32 %v1283_v7, %v536_v9 }
  0xca   : > { %v578_v12 = vmul.f32 0.35355338, %v499_v10  ;;  %v580_v13 = vpack.c.bf16 %v537_v11, %v537_v11 }
  0xcc   : > { %v579_v14 = vpack.c.bf16 %v578_v12, %v578_v12  ;;  %v641_v15 = vunpack.c.l.b16 %v580_v13  ;;  %v587_v16 = vsel %vm582_vm1, %v580_v13, 0 }
  0xcd   : > { %596 = vmatpush.bf16.xpose.msra.mxu3 %v587_v16 }
  0xce   : > { %v636_v17 = vunpack.c.l.b16 %v579_v14  ;;  %v642_v18 = vpack.c.b16 %v641_v15, %v641_v15 }
  0xcf   : > { %v500_v19 = vpop.f32.mrf.mxu0  ;;  %v538_v20 = vpop.f32.mrf.mxu1 }
  0xd0   : > { %704 = vrot.lane.b32.xlu1 %v642_v18, %s1580_s17  ;;  %643 = vrot.lane.b32.xlu0 %v642_v18, %s1581_s21  ;;  %v637_v21 = vpack.c.b16 %v636_v17, %v636_v17 }
  0xd1   : > { %v574_v52 = vpop.f32.mrf.mxu2 }
  0xd2   : > { %702 = vrot.lane.b32.xlu2 %v637_v21, %s1580_s17  ;;  %v575_v53 = vadd.f32 %v1284_v51, %v574_v52 }
  0xd4   : > { %1139 = vmatmul.msk.bf16.vlgmr.msra.gmra.mxu3 %vm582_vm1, %v579_v14  ;;  %v581_v54 = vpack.c.bf16 %v575_v53, %v575_v53 }
  0xd6   : > { %v620_v55 = vsel %vm618_vm2, %v581_v54, 0  ;;  %v679_v56 = vunpack.c.l.b16 %v581_v54 }
  0xd7   : > { %629 = vmatpush.bf16.msrb.mxu0 %v620_v55 }
  0xd8   : > { %762 = vrot.lane.b32.xlu1 %v642_v18, %s1582_s20  ;;  %638 = vrot.lane.b32.xlu0 %v637_v21, %s1581_s21  ;;  %v680_v58 = vpack.c.b16 %v679_v56, %v679_v56 }
  0xd9   : > { %v576_v57 = vpop.f32.mrf.mxu2 }
  0xda   : > { %760 = vrot.lane.b32.xlu2 %v637_v21, %s1582_s20 }
 0x12c   : > { %v703_v27 = vpop.permute.xlu2 %702 }
 0x134   : > { %v761_v33 = vpop.permute.xlu2 %760 }
 0x142   : > { %v705_v23 = vpop.permute.xlu1 %704  ;;  %v644_v24 = vpop.permute.xlu0 %643 }
 0x143   : > { %v649_v25 = vsel %vm582_vm1, %v644_v24, 0  ;;  %v710_v26 = vsel %vm582_vm1, %v705_v23, 0 }
 0x144   : > { %658 = vmatpush.bf16.xpose.msrb.mxu1 %v649_v25  ;;  %719 = vmatpush.bf16.xpose.msrb.mxu3 %v710_v26 }
 0x14a   : > { %v763_v28 = vpop.permute.xlu1 %762  ;;  %v639_v29 = vpop.permute.xlu0 %638 }
 0x14b   : > { %v768_v30 = vsel %vm582_vm1, %v763_v28, 0  ;;  %1141 = vmatmul.msk.bf16.vlgmr.msrb.gmra.mxu1 %vm582_vm1, %v639_v29  ;;  %1144 = vmatmul.msk.bf16.vlgmr.msrb.gmra.mxu3 %vm582_vm1, %v703_v27 }
 0x14c   : > { %777 = vmatpush.bf16.xpose.msra.mxu1 %v768_v30 }
 0x157   : > { %v598_v31 = vpop.f32.mrf.mxu3 }
 0x158   : > { %v602_v32 = vsel %vm582_vm1, %v598_v31, -inf }
 0x159   : > { %603 = vmax.xlane.f32.xlu1 %v602_v32 }
 0x15b   : > { %1147 = vmatmul.msk.bf16.vlgmr.msra.gmra.mxu1 %vm582_vm1, %v761_v33 }
 0x15f   : > { %v600_v34 = vpop.f32.mrf.mxu3 }
 0x1c8   : > { %v660_v37 = vpop.f32.mrf.mxu1 }
 0x1c9   : > { %v664_v38 = vsel %vm582_vm1, %v660_v37, -inf }
 0x1ca   : > { %665 = vmax.xlane.f32.xlu0 %v664_v38 }
 0x1cc   : > { %v604_v39 = vpop.xlane.xlu1 %603 }
 0x1cd   : > { %v605_v40 = vsub.f32 %v598_v31, %v604_v39 }
 0x1ce   : > { %v721_v41 = vpop.f32.mrf.mxu3 }
 0x1cf   : > { %v606_v42 = vmul.f32 1.442695, %v605_v40  ;;  %v725_v50 = vsel %vm582_vm1, %v721_v41, -inf  ;;  %v1173_v40 = vld [vmem:[#allocation10 + $0x8] sm:$0xff] }
 0x1d0   : > { %v662_v43 = vpop.f32.mrf.mxu1  ;;  %865 = vmatpush.bf16.msra.mxu3 %v1173_v40 }
 0x1d1   : > { %1286 = vpow2.f32 %v606_v42 }
 0x1d6   : > { %v723_v44 = vpop.f32.mrf.mxu3 }
 0x1d7   : > { %v1287_v45 = vpop.eup %1286 }
 0x1d8   : > { %v779_v46 = vpop.f32.mrf.mxu1  ;;  %v608_v47 = vsel %vm582_vm1, %v1287_v45, 0.0 }
 0x1d9   : > { %609 = vadd.xlane.f32.xlu1 %v608_v47  ;;  %v783_v48 = vsel %vm582_vm1, %v779_v46, -inf }
 0x1da   : > { %784 = vmax.xlane.f32.xlu2 %v783_v48 }
 0x1e0   : > { %v781_v49 = vpop.f32.mrf.mxu1 }
 0x1e2   : > { %726 = vmax.xlane.f32.xlu2 %v725_v50 }
 0x1fa   : > { %681 = vrot.lane.b32.xlu2 %v680_v58, %s1581_s21 }
 0x23d   : > { %v666_v59 = vpop.xlane.xlu0 %665 }
 0x23e   : > { %v667_v60 = vsub.f32 %v660_v37, %v666_v59 }
 0x240   : > { %v668_v61 = vmul.f32 1.442695, %v667_v60 }
 0x242   : > { %1288 = vpow2.f32 %v668_v61 }
 0x248   : > { %v1289_v62 = vpop.eup %1288 }
 0x249   : > { %v670_v63 = vsel %vm582_vm1, %v1289_v62, 0.0 }
 0x24a   : > { %671 = vadd.xlane.f32.xlu0 %v670_v63 }
 0x24c   : > { %v610_v0 = vpop.xlane.xlu1 %609 }
 0x24d   : > { %1290 = vrcp.f32 %v610_v0  ;;  %v785_v1 = vpop.xlane.xlu2 %784 }
 0x24e   : > { %v786_v2 = vsub.f32 %v779_v46, %v785_v1 }
 0x250   : > { %v787_v3 = vmul.f32 1.442695, %v786_v2 }
 0x252   : > { %1292 = vpow2.f32 %v787_v3 }
 0x253   : > { %v1291_v4 = vpop.eup %1290 }
 0x254   : > { %v612_v5 = vmul.f32 %v1291_v4, %v1287_v45 }
 0x255   : > { %v727_v6 = vpop.xlane.xlu2 %726 }
 0x256   : > { %613 = vst.msk [vmem:[%s1823_s26] sm:$0xff] %vm582_vm1, %v612_v5  ;;  %v728_v7 = vsub.f32 %v721_v41, %v727_v6  ;;  %v614_v8 = vpack.c.bf16 %v612_v5, %v612_v5  ;;  %v1172_v41 = vld [vmem:[#allocation10] sm:$0xff] }
 0x257   : > { %866 = vmatpush.bf16.msra.mxu3 %v1172_v41 }
 0x258   : > { %v1293_v9 = vpop.eup %1292  ;;  %v729_v10 = vmul.f32 1.442695, %v728_v7  ;;  %1140 = vmatmul.msk.bf16.vlgmr.msrb.gmra.mxu0 %vm582_vm1, %v614_v8 }
 0x259   : > { %v789_v11 = vsel %vm582_vm1, %v1293_v9, 0.0 }
 0x25a   : > { %1294 = vpow2.f32 %v729_v10  ;;  %790 = vadd.xlane.f32.xlu0 %v789_v11 }
 0x25d   : > { %v682_v14 = vpop.permute.xlu2 %681 }
 0x25e   : > { %v687_v15 = vsel %vm618_vm2, %v682_v14, 0 }
 0x25f   : > { %696 = vmatpush.bf16.msrb.mxu2 %v687_v15 }
 0x260   : > { %v1295_v12 = vpop.eup %1294 }
 0x261   : > { %v731_v13 = vsel %vm582_vm1, %v1295_v12, 0.0 }
 0x262   : > { %732 = vadd.xlane.f32.xlu1 %v731_v13 }
 0x26e   : > { %797 = vrot.lane.b32.xlu0 %v680_v58, %s1582_s20 }
 0x27b   : > { %739 = vrot.lane.b32.xlu1 %v680_v58, %s1580_s17 }
 0x2bd   : > { %v672_v16 = vpop.xlane.xlu0 %671 }
 0x2be   : > { %1296 = vrcp.f32 %v672_v16 }
 0x2c4   : > { %v1297_v17 = vpop.eup %1296 }
 0x2c5   : > { %v674_v18 = vmul.f32 %v1297_v17, %v1289_v62 }
 0x2c7   : > { %1142 = vst.msk [vmem:[%s1823_s26 + $0x8] sm:$0xff] %vm582_vm1, %v674_v18  ;;  %v677_v19 = vpack.c.bf16 %v674_v18, %v674_v18 }
 0x2c9   : > { %1143 = vmatmul.msk.bf16.vlgmr.msrb.gmra.mxu2 %vm582_vm1, %v677_v19 }
 0x2cd   : > { %v791_v20 = vpop.xlane.xlu0 %790 }
 0x2ce   : > { %1298 = vrcp.f32 %v791_v20 }
 0x2d4   : > { %v1299_v21 = vpop.eup %1298 }
 0x2d5   : > { %v793_v22 = vmul.f32 %v1299_v21, %v1293_v9  ;;  %v631_v23 = vpop.f32.mrf.mxu0  ;;  %v733_v24 = vpop.xlane.xlu1 %732 }
 0x2d6   : > { %1300 = vrcp.f32 %v733_v24 }
 0x2d7   : > { %1148 = vst.msk [vmem:[%s1823_s26 + $0x18] sm:$0xff] %vm582_vm1, %v793_v22  ;;  %v796_v30 = vpack.c.bf16 %v793_v22, %v793_v22 }
 0x2dc   : > { %v1301_v25 = vpop.eup %1300 }
 0x2dd   : > { %v735_v26 = vmul.f32 %v1301_v25, %v1295_v12  ;;  %v633_v27 = vpop.f32.mrf.mxu0 }
 0x2df   : > { %1145 = vst.msk [vmem:[%s1823_s26 + $0x10] sm:$0xff] %vm582_vm1, %v735_v26  ;;  %v738_v33 = vpack.c.bf16 %v735_v26, %v735_v26 }
 0x2e0   : > { %v798_v28 = vpop.permute.xlu0 %797 }
 0x2e1   : > { %v803_v29 = vsel %vm618_vm2, %v798_v28, 0 }
 0x2e2   : > { %812 = vmatpush.bf16.msra.mxu2 %v803_v29 }
 0x2e5   : > { %1149 = vmatmul.msk.bf16.vlgmr.msra.gmra.mxu2 %vm582_vm1, %v796_v30 }
 0x2ed   : > { %v740_v31 = vpop.permute.xlu1 %739 }
 0x2ee   : > { %v745_v32 = vsel %vm618_vm2, %v740_v31, 0 }
 0x2ef   : > { %754 = vmatpush.bf16.msra.mxu0 %v745_v32 }
 0x2f2   : > { %1146 = vmatmul.msk.bf16.vlgmr.msra.gmra.mxu0 %vm582_vm1, %v738_v33 }
 0x34c   : > { %v698_v34 = vpop.f32.mrf.mxu2 }
 0x34d   : > { %819 = vrot.lane.b32.xlu2 %v698_v34, %s1583_s29 }
 0x354   : > { %v700_v35 = vpop.f32.mrf.mxu2 }
 0x368   : > { %v814_v36 = vpop.f32.mrf.mxu2 }
 0x369   : > { %827 = vrot.lane.b32.xlu2 %v814_v36, %s1584_s22 }
 0x36f   : > { %v756_v37 = vpop.f32.mrf.mxu0 }
 0x370   : > { %823 = vrot.lane.b32.xlu0 %v756_v37, %s1585_s14  ;;  %v816_v38 = vpop.f32.mrf.mxu2 }
 0x377   : > { %v758_v39 = vpop.f32.mrf.mxu0 }
 0x3a7   : > { %v820_v42 = vpop.permute.xlu2 %819 }
 0x3a8   : > { %v830_v43 = vsel %vm582_vm1, %v631_v23, %v820_v42 }
 0x3c3   : > { %v828_v45 = vpop.permute.xlu2 %827 }
 0x3e2   : > { %v824_v44 = vpop.permute.xlu0 %823 }
 0x3e3   : > { %v832_v46 = vsel %vm831_vm3, %v830_v43, %v824_v44 }
 0x3e4   : > { %v834_v47 = vsel %vm833_vm4, %v832_v46, %v828_v45 }
 0x3e5   : > { %v835_v48 = vpack.c.bf16 %v834_v47, %v834_v47 }
 0x3e7   : > { %1158 = vmatmul.msk.bf16.vlgmr.msra.gmra.mxu3 %vm485_vm0, %v835_v48 }
 0x3e8   : > { %1479 = shalt.err (!%p1476_p11)
}
 0x3e9   : > { %s1586_s21 = smov 128   ;;  %s1161_s20 = sshll.u32 %s1566_s30, 3 }
 0x3ea   : > { %1190 = dma.vmem_to_hbm [thread:$0]  (%p1712_p4), %s908_s19, 512, %s910_s5, %s879_s7, %s1586_s21, %s1586_s21, %s1583_s29  }
 0x3eb   : > { %s1108_s3 = sshll.u32 %s1764_s6, 3  ;;  %s1953_s26 = sld [smem:[#allocation30_spill]] }
 0x3ec   : > { %s1954_s24 = sld [smem:[#allocation29_spill]]  ;;  %s453_s18 = scalar_lea.vmem [#allocation11], %s1108_s3 }
 0x3ed   : > { %s892_s27 = sshll.u32 %s453_s18, 4  ;;  %s874_s30 = scalar_lea.sflag [#allocation4], %s1764_s6  ;;  %s893_s27 = int_to_ptr.vmem [resolvable:$true] %s892_s27 }
 0x3f1   : > { %s890_s22 = scalar_lea.hbm %s1953_s26, %s1161_s20  ;;  %s1500_s9 = scalar_lea.hbm %s1953_s26, 16 }
 0x3f2   : > { %v1285_v49 = vld [vmem:[%s1954_s24] ss:$0 sm:$0xff]  ;;  %s894_s8 = sshll.u32 %s890_s22, 4  ;;  %s895_s8 = int_to_ptr.hbm [resolvable:$true] %s894_s8 }
 0x3f3   : > { %s1494_s29 = sshra.s32 %s895_s8, 4  ;;  %s1495_s29 = int_to_ptr.hbm [resolvable:$true] %s1494_s29 }
 0x3f4   : > { %s1496_s19 = scalar_lea.hbm %s1495_s29, 8  ;;  %p1501_p2 = scmp.lt.s32.totalorder %s1495_s29, %s1953_s26 }
 0x3f5   : > { %p1497_p12 = scmp.ne.s32.totalorder %s1495_s29, %s1496_s19  ;;  %p1502_p7 = scmp.lt.s32.totalorder %s1500_s9, %s1496_s19 }
 0x3f7   : > { %p1498_p13 = pnand %p1497_p12, %p1712_p4  ;;  %p1503_p1 = por %p1502_p7, %p1501_p2 }
 0x3f9   : > { %p1499_p0 = pneg %p1498_p13 }
 0x3fb   : > { %p1504_p3 = pnand %p1503_p1, %p1499_p0 }
 0x46a   : > { %v868_v50 = vpop.f32.mrf.mxu3 }
 0x46b   : > { %v869_v51 = vadd.f32 %v1285_v49, %v868_v50 }
 0x46d   : > { %872 = vst.msk [vmem:[%s453_s18] sm:$0xff] %vm485_vm0, %v869_v51 }
 0x46e   : > { %1507 = shalt.err (!%p1504_p3)
}
 0x46f   : > { %1189 = dma.vmem_to_hbm [thread:$0]  (%p1712_p4), %s893_s27, 128, %s895_s8, %s874_s30  }
 0x472   : > { %v870_v52 = vpop.f32.mrf.mxu3 }
 0x473 PF: > { %s1955_s6 = sld [smem:[#allocation19_spill]] }
 0x474   : > { %s1957_s16 = sld [smem:[#allocation22_spill]] }
 0x479   : > { %s924_s17 = sand.u32 1, %s1955_s6  }
 0x47a   : > { %p1958_p5 = scmp.ge.s32.totalorder %s1957_s16, 2  ;;  %s925_s21 = scalar_lea.sflag [#allocation4], %s924_s17 }
 0x47c   : > { %p1211_p6 = pnand %p1958_p5, %p1720_p9 }
 0x47e   : > { %p1212_p8 = pneg %p1211_p6 }
 0x480   : > { %1545 = dma.done.wait (%p1212_p8), %s925_s21, 128  }
 0x481   : > { %1547 = vsyncadd (%p1212_p8), %s925_s21, 4294967168  ;;  %s935_s20 = scalar_lea.sflag [#allocation13], %s924_s17 }
 0x482   : > { %1549 = dma.done.wait (%p1212_p8), %s935_s20, 512  }
 0x483   : > { %1551 = vsyncadd (%p1212_p8), %s935_s20, 4294966784  ;;  %s32_s10 = sadd.s32 1, %s1957_s16   ;;  %s1959_s12 = sld [smem:[#allocation20_spill]] }
 0x484   : > { %p29_p10 = scmp.ge.s32.totalorder %s32_s10, 4   ;;  %s1960_s29 = sld [smem:[#allocation24_spill]] }
 0x485   : > { %s1961_s30 = sld [smem:[#allocation21_spill]]  ;;  %s1963_s27 = smov %s1558_s28 }
 0x486   : > { %s1962_s9 = sld [smem:[#allocation23_spill]]  ;;  %31 = sbr.rel (!%p29_p10) target bundleno = 18 (0x12), region = 149 }
 0x489   : > { %s1964_s28 = smov %s1959_s12 }
 0x48b   :  { %941 = vsyncpa [#allocation3], 1 }
 0x48c   :  { %943 = vsyncpa [#allocation3 + $0x1], 1 }
 0x48d   :  { %944 = vsyncpa [#allocation6], 1 }
 0x48e   :  { %946 = vsyncpa [#allocation6 + $0x1], 1 }
 0x48f   :  { %947 = vsyncpa [#allocation9], 1 }
 0x490   :  { %948 = vsyncpa [#allocation4], 1 }
 0x491   :  { %950 = vsyncpa [#allocation4 + $0x1], 1 }
 0x492   :  { %951 = vsyncpa [#allocation13], 1 }
 0x493   :  { %953 = vsyncpa [#allocation13 + $0x1], 1 }

</bundles_post_ra>
